<compile_context>
chip_gen: v7x
topology: tpu7x:2x2x1
jax: 0.10.0
libtpu: 0.0.40
codegen_flags: <defaults>
</compile_context>

<pallas_src>
import numpy as np
import jax
import jax.numpy as jnp
from jax.experimental import pallas as pl
from jax.experimental.pallas import tpu as pltpu

J = 21      # MANO joints (wrist + 20); field2ndim['distance'] = 20 after dropping wrist
C = 3       # xyz


# ----------------------------------------------------------------------------
# Pallas kernel: per-sample squared distances joint <-> grid point (+ mask).
# ----------------------------------------------------------------------------
def _dist_kernel(xyz_ref, joints_ref, j2_ref, mask_ref, out_ref):
    # xyz_ref:    (BN, 3, TP)     f32 grid points (channel on sublane, points on lane)
    # joints_ref: (BN, Jout, 3)   f32 normalized joints
    # j2_ref:     (BN, Jout, 1)   f32 precomputed ||j||^2 (hoisted out of the kernel)
    # mask_ref:   (BN, 1, 1)      f32 per-sample zero-pose mask (1 keep / 0 zero)
    # out_ref:    (BN, Jout, TP)  output block
    xyz = xyz_ref[...]                    # (BN, 3, TP)
    joints = joints_ref[...]              # (BN, Jout, 3)

    # <j, x> as 3 broadcast multiply-adds on the VPU (K = 3 is far too small
    # for the MXU, and the MXU result would need an extra VMEM round-trip).
    cross = (joints[:, :, 0:1] * xyz[:, 0:1, :]
             + joints[:, :, 1:2] * xyz[:, 1:2, :]
             + joints[:, :, 2:3] * xyz[:, 2:3, :])            # (BN, Jout, TP)
    # ||x||^2, amortized over the Jout rows; stays on the VPU (no XLU reduce).
    x2 = (xyz[:, 0:1, :] * xyz[:, 0:1, :]
          + xyz[:, 1:2, :] * xyz[:, 1:2, :]
          + xyz[:, 2:3, :] * xyz[:, 2:3, :])                  # (BN, 1, TP)

    # ||x - j||^2 = ||x||^2 + ||j||^2 - 2<j,x>, clamped at 0 (cancellation
    # guard), masked, cast, and stored as ONE fused statement so Mosaic
    # streams vreg-by-vreg into out_ref (no block-sized temp, no spill).
    out_ref[...] = (jnp.maximum((x2 - 2.0 * cross) + j2_ref[...], 0.0)
                    * mask_ref[...]).astype(out_ref.dtype)


def _pick_tile(P, max_tp=8192):
    """Largest multiple of 128 that divides P, capped at max_tp."""
    tp = min(P, max_tp)
    tp -= tp % 128
    while tp > 128 and P % tp != 0:
        tp -= 128
    return max(tp, 128)


def _largest_divisor_le(n, cap):
    cap = max(1, min(n, cap))
    for d in range(cap, 0, -1):
        if n % d == 0:
            return d
    return 1


def pairwise_sqdist_masked(nXyz_cp, nJoints, mask, *, tp=None, bn=None,
                           out_dtype=jnp.float32):
    """nXyz_cp: (N, 3, P) f32, nJoints: (N, Jout, 3) f32, mask: (N,) f32
    -> (N, Jout, P) out_dtype."""
    N, _, P = nXyz_cp.shape
    Jout = nJoints.shape[1]
    assert P % 128 == 0, "flattened grid (H^3) must be a multiple of 128"

    if tp is None:
        tp = _pick_tile(P)
        # v7x shards 'parallel' grid axes over 2 TensorCores: if the batch
        # axis cannot supply >=2 programs, split the point axis instead.
        if N < 2 and P // tp < 2 and P >= 256:
            tp = _pick_tile(P, max_tp=max(128, P // 2))
    assert tp % 128 == 0 and P % tp == 0

    if bn is None:
        # amortize ~0.35us per-grid-step overhead when the lane tile is small
        target = max(1, 8192 // tp)
        if P // tp < 2:
            # keep >=2 programs along the parallel batch axis for v7x's 2 TCs
            target = min(target, max(1, N // 2))
        bn = _largest_divisor_le(N, target)
    assert N % bn == 0

    grid = (N // bn, P // tp)

    # ||j||^2 hoisted out of the kernel (tiny, computed once instead of per tile)
    j2 = jnp.sum(nJoints * nJoints, axis=-1, keepdims=True)      # (N, Jout, 1)
    mask3 = mask.reshape(N, 1, 1).astype(jnp.float32)            # (N, 1, 1)

    grid_spec = pl.GridSpec(
        grid=grid,
        in_specs=[
            pl.BlockSpec((bn, C, tp), lambda b, p: (b, 0, p)),
            pl.BlockSpec((bn, Jout, C), lambda b, p: (b, 0, 0)),
            pl.BlockSpec((bn, Jout, 1), lambda b, p: (b, 0, 0)),
            pl.BlockSpec((bn, 1, 1), lambda b, p: (b, 0, 0)),
        ],
        out_specs=pl.BlockSpec((bn, Jout, tp), lambda b, p: (b, 0, p)),
    )

    cost = pl.CostEstimate(
        flops=9 * N * Jout * P + 6 * N * P,
        transcendentals=0,
        bytes_accessed=4 * (N * C * P + N * Jout * (C + 1) + N)
        + N * Jout * P * jnp.dtype(out_dtype).itemsize,
    )

    return pl.pallas_call(
        _dist_kernel,
        out_shape=jax.ShapeDtypeStruct((N, Jout, P), out_dtype),
        grid_spec=grid_spec,
        compiler_params=pltpu.CompilerParams(
            dimension_semantics=("parallel", "parallel")),
        cost_estimate=cost,
    )(nXyz_cp, nJoints, j2, mask3)


# ----------------------------------------------------------------------------
# Glue: trilinear resize (matches F.interpolate mode='trilinear',
# align_corners=False), synthetic MANO joints + nTh normalization transform.
# ----------------------------------------------------------------------------
def _resize_axis(x, axis, out_size):
    in_size = x.shape[axis]
    if in_size == out_size:
        return x
    src = (jnp.arange(out_size, dtype=jnp.float32) + 0.5) * (in_size / out_size) - 0.5
    src = jnp.clip(src, 0.0, in_size - 1.0)
    i0 = jnp.floor(src).astype(jnp.int32)
    i1 = jnp.minimum(i0 + 1, in_size - 1)
    w = src - i0.astype(jnp.float32)
    x0 = jnp.take(x, i0, axis=axis)
    x1 = jnp.take(x, i1, axis=axis)
    wshape = [1] * x.ndim
    wshape[axis] = out_size
    w = w.reshape(wshape)
    return x0 * (1.0 - w) + x1 * w


def trilinear_resize_ncdhw(x, H):
    # x: (N, C, D, Hh, W) -> (N, C, H, H, H)
    x = _resize_axis(x, 2, H)
    x = _resize_axis(x, 3, H)
    x = _resize_axis(x, 4, H)
    return x


def make_synthetic_mano_params(key):
    # TODO(synk): real ManopthWrapper (MANO) forward kinematics & get_nTh are
    # external assets; replaced by a deterministic linear joint regressor.
    k1, k2 = jax.random.split(key)
    mean_joints = 0.1 * jax.random.normal(k1, (J, C), dtype=jnp.float32)
    joint_reg = 0.01 * jax.random.normal(k2, (45, J * C), dtype=jnp.float32)
    return mean_joints, joint_reg


def synthetic_hand_joints(hA, mean_joints, joint_reg):
    # hA: (N, 45) -> hJoints: (N, J, 3)
    N = hA.shape[0]
    return mean_joints[None] + (hA @ joint_reg).reshape(N, J, C)


def synthetic_nTh(hJoints, scale=5.0):
    # normalization transform: scale + translate joint 5 to origin (like get_nTh)
    N = hJoints.shape[0]
    R = scale * jnp.broadcast_to(jnp.eye(3, dtype=jnp.float32), (N, 3, 3))
    t = -scale * hJoints[:, 5, :]                        # (N, 3)
    top = jnp.concatenate([R, t[:, :, None]], axis=-1)   # (N, 3, 4)
    bot = jnp.broadcast_to(jnp.array([[0., 0., 0., 1.]], jnp.float32), (N, 1, 4))
    return jnp.concatenate([top, bot], axis=1)           # (N, 4, 4)


def apply_transform(points, T):
    # points: (N, K, 3), T: (N, 4, 4) -> (N, K, 3)
    return jnp.einsum('nij,nkj->nki', T[:, :3, :3], points) + T[:, None, :3, 3]


# ----------------------------------------------------------------------------
# forward_distance (field='distance')
# ----------------------------------------------------------------------------
def forward_distance(hA, H, nXyz, mano_params, rtn_wrist=True,
                     out_dtype=jnp.float32):
    """hA: (N, 45) f32; nXyz: (N, D, Hh, W, 3) f32 -> (N, J or J-1, H, H, H)."""
    N = hA.shape[0]
    # n d h w c -> n c d h w, trilinear resize to (H, H, H)
    x = jnp.transpose(nXyz, (0, 4, 1, 2, 3)).astype(jnp.float32)
    x = trilinear_resize_ncdhw(x, H)                      # (N, 3, H, H, H)
    xyz_cp = x.reshape(N, C, H * H * H)                   # (N, 3, P)

    mean_joints, joint_reg = mano_params
    hJoints = synthetic_hand_joints(hA, mean_joints, joint_reg)   # (N, J, 3)
    nTh = synthetic_nTh(hJoints)                                  # (N, 4, 4)
    nJoints = apply_transform(hJoints, nTh)                       # (N, J, 3)
    if not rtn_wrist:
        # fused wrist drop: wrist row never computed / written by the kernel
        nJoints = nJoints[:, 1:]

    # zero-pose mask: samples whose hA is identically 0 are zeroed out
    zero_mask = ((hA != 0).sum(-1) == 0).astype(jnp.float32)      # (N,)
    mask = 1.0 - zero_mask

    nDist_flat = pairwise_sqdist_masked(xyz_cp, nJoints, mask,
                                        out_dtype=out_dtype)      # (N, Jout, P) [Pallas]
    Jout = nJoints.shape[1]
    return nDist_flat.reshape(N, Jout, H, H, H)


# ----------------------------------------------------------------------------
# main
# ----------------------------------------------------------------------------
if __name__ == "__main__":
    key = jax.random.PRNGKey(0)
    k_hA, k_mano = jax.random.split(key)

    N, H, D_in = 2, 8, 4                                  # H^3 = 512 (multiple of 128)
    hA = 0.2 * jax.random.normal(k_hA, (N, 45), dtype=jnp.float32)
    hA = hA.at[1].set(0.0)                                # exercise the zero-pose mask

    # SDF-style coordinate grid in [-0.2, 0.2], layout n d h w c
    lim = 0.2
    lin = jnp.linspace(-lim, lim, D_in, dtype=jnp.float32)
    gd, gh, gw = jnp.meshgrid(lin, lin, lin, indexing='ij')
    nXyz = jnp.stack([gd, gh, gw], axis=-1)               # (D, H, W, 3)
    nXyz = jnp.broadcast_to(nXyz[None], (N, D_in, D_in, D_in, 3))

    mano_params = make_synthetic_mano_params(k_mano)

    out = forward_distance(hA, H, nXyz, mano_params, rtn_wrist=True)
    out = jax.block_until_ready(out)
    assert out.shape == (N, J, H, H, H), out.shape

    out_nw = forward_distance(hA, H, nXyz, mano_params, rtn_wrist=False)
    out_nw = jax.block_until_ready(out_nw)
    assert out_nw.shape == (N, J - 1, H, H, H), out_nw.shape

    # bf16 output path (halves the dominant HBM writeback traffic)
    out_bf16 = forward_distance(hA, H, nXyz, mano_params, rtn_wrist=True,
                                out_dtype=jnp.bfloat16)
    out_bf16 = jax.block_until_ready(out_bf16)
    assert out_bf16.dtype == jnp.bfloat16

    # Pure-JAX reference check for the kernel's hot path (direct (x-j)^2 form).
    x = jnp.transpose(nXyz, (0, 4, 1, 2, 3)).astype(jnp.float32)
    x = trilinear_resize_ncdhw(x, H).reshape(N, C, H * H * H)
    xyz_p = jnp.transpose(x, (0, 2, 1))                   # (N, P, 3)
    hJ = synthetic_hand_joints(hA, *mano_params)
    nJ = apply_transform(hJ, synthetic_nTh(hJ))
    ref = ((xyz_p[:, None, :, :] - nJ[:, :, None, :]) ** 2).sum(-1)
    mask = 1.0 - ((hA != 0).sum(-1) == 0).astype(jnp.float32)
    ref = (ref * mask[:, None, None]).reshape(N, J, H, H, H)
    np.testing.assert_allclose(np.asarray(out), np.asarray(ref), rtol=1e-5, atol=2e-5)
    np.testing.assert_allclose(np.asarray(out_nw), np.asarray(ref[:, 1:]),
                               rtol=1e-5, atol=2e-5)
    np.testing.assert_allclose(np.asarray(out_bf16.astype(jnp.float32)),
                               np.asarray(ref), rtol=2e-2, atol=2e-2)

    print("KERNEL_OK")
</pallas_src>

<mosaic_0001>
module attributes {stable_mosaic.version = 11 : i64} {
  func.func @_dist_kernel(%arg0: i32, %arg1: i32, %arg2: memref<1x3x512xf32, #tpu.memory_space<vmem>>, %arg3: memref<1x21x3xf32, #tpu.memory_space<vmem>>, %arg4: memref<1x21x1xf32, #tpu.memory_space<vmem>>, %arg5: memref<1x1x1xf32, #tpu.memory_space<vmem>>, %arg6: memref<1x21x512xf32, #tpu.memory_space<vmem>>) attributes {dimension_semantics = [#tpu.dimension_semantics<parallel>, #tpu.dimension_semantics<parallel>], iteration_bounds = array<i64: 2, 1>, scalar_prefetch = 0 : i64, scratch_operands = 0 : i64, tpu.core_type = #tpu.core_type<tc>, window_params = [{transform_indices = @transform_0, window_bounds = array<i64: 1, 3, 512>}, {transform_indices = @transform_1, window_bounds = array<i64: 1, 21, 3>}, {transform_indices = @transform_2, window_bounds = array<i64: 1, 21, 1>}, {transform_indices = @transform_3, window_bounds = array<i64: 1, 1, 1>}, {transform_indices = @transform_4, window_bounds = array<i64: 1, 21, 512>}]} {
    %c0 = arith.constant 0 : index
    %c0_0 = arith.constant 0 : index
    %c0_1 = arith.constant 0 : index
    %0 = vector.load %arg2[%c0, %c0_0, %c0_1] : memref<1x3x512xf32, #tpu.memory_space<vmem>>, vector<1x3x512xf32>
    %c0_2 = arith.constant 0 : index
    %c0_3 = arith.constant 0 : index
    %c0_4 = arith.constant 0 : index
    %1 = vector.load %arg3[%c0_2, %c0_3, %c0_4] : memref<1x21x3xf32, #tpu.memory_space<vmem>>, vector<1x21x3xf32>
    %2 = vector.extract_strided_slice %1 {offsets = [0, 0, 0], sizes = [1, 21, 1], strides = [1, 1, 1]} : vector<1x21x3xf32> to vector<1x21x1xf32>
    %3 = vector.extract_strided_slice %0 {offsets = [0, 0, 0], sizes = [1, 1, 512], strides = [1, 1, 1]} : vector<1x3x512xf32> to vector<1x1x512xf32>
    %4 = vector.broadcast %2 : vector<1x21x1xf32> to vector<1x21x512xf32>
    %5 = vector.broadcast %3 : vector<1x1x512xf32> to vector<1x21x512xf32>
    %6 = arith.mulf %4, %5 : vector<1x21x512xf32>
    %7 = vector.extract_strided_slice %1 {offsets = [0, 0, 1], sizes = [1, 21, 1], strides = [1, 1, 1]} : vector<1x21x3xf32> to vector<1x21x1xf32>
    %8 = vector.extract_strided_slice %0 {offsets = [0, 1, 0], sizes = [1, 1, 512], strides = [1, 1, 1]} : vector<1x3x512xf32> to vector<1x1x512xf32>
    %9 = vector.broadcast %7 : vector<1x21x1xf32> to vector<1x21x512xf32>
    %10 = vector.broadcast %8 : vector<1x1x512xf32> to vector<1x21x512xf32>
    %11 = arith.mulf %9, %10 : vector<1x21x512xf32>
    %12 = arith.addf %6, %11 : vector<1x21x512xf32>
    %13 = vector.extract_strided_slice %1 {offsets = [0, 0, 2], sizes = [1, 21, 1], strides = [1, 1, 1]} : vector<1x21x3xf32> to vector<1x21x1xf32>
    %14 = vector.extract_strided_slice %0 {offsets = [0, 2, 0], sizes = [1, 1, 512], strides = [1, 1, 1]} : vector<1x3x512xf32> to vector<1x1x512xf32>
    %15 = vector.broadcast %13 : vector<1x21x1xf32> to vector<1x21x512xf32>
    %16 = vector.broadcast %14 : vector<1x1x512xf32> to vector<1x21x512xf32>
    %17 = arith.mulf %15, %16 : vector<1x21x512xf32>
    %18 = arith.addf %12, %17 : vector<1x21x512xf32>
    %19 = vector.extract_strided_slice %0 {offsets = [0, 0, 0], sizes = [1, 1, 512], strides = [1, 1, 1]} : vector<1x3x512xf32> to vector<1x1x512xf32>
    %20 = vector.extract_strided_slice %0 {offsets = [0, 0, 0], sizes = [1, 1, 512], strides = [1, 1, 1]} : vector<1x3x512xf32> to vector<1x1x512xf32>
    %21 = arith.mulf %19, %20 : vector<1x1x512xf32>
    %22 = vector.extract_strided_slice %0 {offsets = [0, 1, 0], sizes = [1, 1, 512], strides = [1, 1, 1]} : vector<1x3x512xf32> to vector<1x1x512xf32>
    %23 = vector.extract_strided_slice %0 {offsets = [0, 1, 0], sizes = [1, 1, 512], strides = [1, 1, 1]} : vector<1x3x512xf32> to vector<1x1x512xf32>
    %24 = arith.mulf %22, %23 : vector<1x1x512xf32>
    %25 = arith.addf %21, %24 : vector<1x1x512xf32>
    %26 = vector.extract_strided_slice %0 {offsets = [0, 2, 0], sizes = [1, 1, 512], strides = [1, 1, 1]} : vector<1x3x512xf32> to vector<1x1x512xf32>
    %27 = vector.extract_strided_slice %0 {offsets = [0, 2, 0], sizes = [1, 1, 512], strides = [1, 1, 1]} : vector<1x3x512xf32> to vector<1x1x512xf32>
    %28 = arith.mulf %26, %27 : vector<1x1x512xf32>
    %29 = arith.addf %25, %28 : vector<1x1x512xf32>
    %cst = arith.constant 2.000000e+00 : f32
    %30 = vector.broadcast %cst : f32 to vector<1x21x512xf32>
    %31 = arith.mulf %30, %18 : vector<1x21x512xf32>
    %32 = vector.broadcast %29 : vector<1x1x512xf32> to vector<1x21x512xf32>
    %33 = arith.subf %32, %31 : vector<1x21x512xf32>
    %c0_5 = arith.constant 0 : index
    %c0_6 = arith.constant 0 : index
    %c0_7 = arith.constant 0 : index
    %34 = vector.load %arg4[%c0_5, %c0_6, %c0_7] : memref<1x21x1xf32, #tpu.memory_space<vmem>>, vector<1x21x1xf32>
    %35 = vector.broadcast %34 : vector<1x21x1xf32> to vector<1x21x512xf32>
    %36 = arith.addf %33, %35 : vector<1x21x512xf32>
    %cst_8 = arith.constant 0.000000e+00 : f32
    %37 = vector.broadcast %cst_8 : f32 to vector<1x21x512xf32>
    %38 = arith.maximumf %36, %37 : vector<1x21x512xf32>
    %c0_9 = arith.constant 0 : index
    %c0_10 = arith.constant 0 : index
    %c0_11 = arith.constant 0 : index
    %39 = vector.load %arg5[%c0_9, %c0_10, %c0_11] : memref<1x1x1xf32, #tpu.memory_space<vmem>>, vector<1x1x1xf32>
    %40 = vector.broadcast %39 : vector<1x1x1xf32> to vector<1x21x512xf32>
    %41 = arith.mulf %38, %40 : vector<1x21x512xf32>
    %c0_12 = arith.constant 0 : index
    %c0_13 = arith.constant 0 : index
    %c0_14 = arith.constant 0 : index
    %42 = vector.load %arg6[%c0_12, %c0_13, %c0_14] : memref<1x21x512xf32, #tpu.memory_space<vmem>>, vector<1x21x512xf32>
    tpu.vector_store %arg6[%c0_12, %c0_13, %c0_14], %41 {strides = array<i32>} : memref<1x21x512xf32, #tpu.memory_space<vmem>>, vector<1x21x512xf32>,
    return
  }
  func.func @transform_0(%arg0: i32, %arg1: i32) -> (i32, i32, i32) {
    %c0_i32 = arith.constant 0 : i32
    %c0_i32_0 = arith.constant 0 : i32
    return %arg0, %c0_i32, %arg1 : i32, i32, i32
  }
  func.func @transform_1(%arg0: i32, %arg1: i32) -> (i32, i32, i32) {
    %c0_i32 = arith.constant 0 : i32
    %c0_i32_0 = arith.constant 0 : i32
    %c0_i32_1 = arith.constant 0 : i32
    return %arg0, %c0_i32, %c0_i32_0 : i32, i32, i32
  }
  func.func @transform_2(%arg0: i32, %arg1: i32) -> (i32, i32, i32) {
    %c0_i32 = arith.constant 0 : i32
    %c0_i32_0 = arith.constant 0 : i32
    %c0_i32_1 = arith.constant 0 : i32
    return %arg0, %c0_i32, %c0_i32_0 : i32, i32, i32
  }
  func.func @transform_3(%arg0: i32, %arg1: i32) -> (i32, i32, i32) {
    %c0_i32 = arith.constant 0 : i32
    %c0_i32_0 = arith.constant 0 : i32
    %c0_i32_1 = arith.constant 0 : i32
    return %arg0, %c0_i32, %c0_i32_0 : i32, i32, i32
  }
  func.func @transform_4(%arg0: i32, %arg1: i32) -> (i32, i32, i32) {
    %c0_i32 = arith.constant 0 : i32
    %c0_i32_0 = arith.constant 0 : i32
    return %arg0, %c0_i32, %arg1 : i32, i32, i32
  }
}

</mosaic_0001>

<bundles_post_ra>
// kernel: tpu_custom_call.1
= control target key start
LH: loop header
LB: loop body
LE: loop exit
PB: predicated region body
PF: predicated region fallthrough
CT: control target
= control target key end

     0   :  { %s890_s15 = smov 0   ;;  %s892_s16 = smov 0   ;;  %s992_s0 = inlined_call_operand.vmem [shape: f32[2,3,512], index: 0, kind: input, shape index: {}]   ;;  %s993_s1 = inlined_call_operand.vmem [shape: f32[2,21,3], index: 1, kind: input, shape index: {}]   ;;  %s994_s2 = inlined_call_operand.vmem [shape: f32[2,21,1], index: 2, kind: input, shape index: {}]   ;;  %s995_s3 = inlined_call_operand.vmem [shape: f32[2,1,1], index: 3, kind: input, shape index: {}]   ;;  %s996_s4 = inlined_call_operand.vmem [shape: f32[2,21,512], index: 4, kind: output, shape index: {}]  }
   0x1   :  { %s894_s17 = smov 0  }
   0x2 LB: > { %s26_s18 = sadd.s32 1, %s856_s16  ;;  %p787_p0 = scmp.ge.s32.totalorder %s860_s17, 1  ;;  %s860_s17 = sphi %s894_s17, %s14_s17   ;;  %s856_s16 = sphi %s892_s16, %s998_s16   ;;  %s852_s15 = sphi %s890_s15, %s997_s15  }
   0x3   : > { %p28_p1 = scmp.ge.s32.totalorder %s26_s18, 2  ;;  %p211_p2 = scmp.lt.s32.totalorder %s860_s17, 3 }
   0x5   : > { %s1000_s18 = smov (%p28_p1, %s26_s18), 0  ;;  %p212_p3 = pnand %p787_p0, %p211_p2 }
   0x6   : > { %p259_p4 = scmp.lt.s32.totalorder (!%p212_p3), %s852_s15, 1  ;;  %v862_v0 = vmov (!%p212_p3), 0   ;;  %v863_v4 = vmov (!%p212_p3), 1   ;;  %v864_v5 = vmov (!%p212_p3), 2   ;;  %v313_v14 = vlaneseq (!%p212_p3) }
   0x7   : > { %215 = sbr.rel (%p212_p3) target bundleno = 187 (0xbb), region = 36  ;;  %831 = vset.pattern.permute.xlu1 (!%p212_p3), %v862_v0  ;;  %830 = vset.pattern.permute.xlu0 (!%p212_p3), %v862_v0 }
   0x8   : > { %v314_v17 = vshrl.u32 (!%p212_p3), %v313_v14, 7 }
   0xa   : > { %v315_v22 = vsub.s32 (!%p212_p3), 0, %v314_v17  ;;  %v319_v23 = vsub.s32 (!%p212_p3), 4, %v314_v17  ;;  %v375_v24 = vsub.s32 (!%p212_p3), 1, %v314_v17  ;;  %v379_v25 = vsub.s32 (!%p212_p3), 5, %v314_v17 }
   0xb   : > { %v447_v26 = vsub.s32 (!%p212_p3), 2, %v314_v17  ;;  %v451_v27 = vsub.s32 (!%p212_p3), 6, %v314_v17 }
   0xe   : > { %s1002_s15 = smov (!%p259_p4, %s852_s15), 1 }
   0xf   : > { %s801_s19 = smul.u32 24, %s1002_s15  ;;  %s280_s28 = scalar_lea.vmem %s995_s3, %s1002_s15 }
  0x10   : > { %v797_v9 = vld [vmem:[%s280_s28] ss:$0 sm:$0xff]  ;;  %s800_s29 = sshll.u32 %s1002_s15, 4  ;;  %s802_s7 = smul.u32 96, %s1002_s15 }
  0x11   : > { %s272_s22 = scalar_lea.vmem %s993_s1, %s801_s19  ;;  %s277_s25 = scalar_lea.vmem %s994_s2, %s801_s19 }
  0x12   : > { %v295_v1 = vld [vmem:[%s272_s22 + $0x10] sm:$0x1f]  ;;  %v293_v2 = vld [vmem:[%s272_s22] sm:$0xff]  ;;  %v294_v3 = vld [vmem:[%s272_s22 + $0x8] sm:$0xff]  ;;  %s266_s6 = scalar_lea.vmem %s992_s0, %s800_s29  ;;  %s969_s10 = scalar_lea.vmem %s996_s4, %s802_s7 }
  0x13   : > { %308 = vperm.xlu1 %831, %v295_v1   ;;  %298 = vperm.xlu0 %830, %v293_v2   ;;  %v588_v6 = vld [vmem:[%s277_s25 + $0x8] sm:$0xff]  ;;  %v587_v7 = vld [vmem:[%s277_s25] sm:$0xff]  ;;  %v589_v8 = vld [vmem:[%s277_s25 + $0x10] sm:$0x1f] }
  0x14   : > { %v291_v10 = vld [vmem:[%s266_s6] sm:$0x77]  ;;  %v292_v11 = vld [vmem:[%s266_s6 + $0x8] sm:$0x77] }
  0x15   : > { %v505_v12 = vmul.f32 %v291_v10, %v291_v10  ;;  %v506_v13 = vmul.f32 %v292_v11, %v292_v11  ;;  %v316_v30 = vrot.slane %v291_v10, %v315_v22  ;;  %v320_v31 = vrot.slane %v291_v10, %v319_v23 }
  0x16   : > { %v324_v32 = vrot.slane %v292_v11, %v315_v22  ;;  %v328_v33 = vrot.slane %v292_v11, %v319_v23  ;;  %v376_v34 = vrot.slane %v291_v10, %v375_v24  ;;  %v380_v35 = vrot.slane %v291_v10, %v379_v25 }
  0x17   : > { %832 = vset.pattern.permute.xlu1 %v863_v4  ;;  %303 = vperm.xlu0 %830, %v294_v3   ;;  %v793_v15 = vrot.slane %v505_v12, 9  ;;  %v794_v16 = vrot.slane %v506_v13, 9  ;;  %v795_v20 = vrot.slane %v505_v12, 10  ;;  %v796_v21 = vrot.slane %v506_v13, 10 }
  0x18   : > { %362 = vperm.xlu1 %832, %v293_v2   ;;  %v384_v36 = vrot.slane %v292_v11, %v375_v24  ;;  %v388_v37 = vrot.slane %v292_v11, %v379_v25  ;;  %v448_v40 = vrot.slane %v291_v10, %v447_v26  ;;  %v452_v41 = vrot.slane %v291_v10, %v451_v27 }
  0x19   : > { %v515_v18 = vadd.f32 %v793_v15, %v505_v12  ;;  %v516_v19 = vadd.f32 %v794_v16, %v506_v13  ;;  %v456_v42 = vrot.slane %v292_v11, %v447_v26  ;;  %v460_v43 = vrot.slane %v292_v11, %v451_v27 }
  0x1a   : > { %v336_v48 = vrot.slane %v316_v30, %v315_v22  ;;  %v340_v49 = vrot.slane %v320_v31, %v315_v22  ;;  %v344_v50 = vrot.slane %v324_v32, %v315_v22  ;;  %v348_v51 = vrot.slane %v328_v33, %v315_v22 }
  0x1b   : > { %833 = vset.pattern.permute.xlu0 %v863_v4  ;;  %v523_v28 = vadd.f32 %v795_v20, %v515_v18  ;;  %v524_v29 = vadd.f32 %v796_v21, %v516_v19  ;;  %v396_v52 = vrot.slane %v376_v34, %v375_v24  ;;  %v400_v53 = vrot.slane %v380_v35, %v375_v24 }
  0x1c   : > { %370 = vperm.xlu1 %832, %v295_v1   ;;  %366 = vperm.xlu0 %833, %v294_v3   ;;  %v404_v54 = vrot.slane %v384_v36, %v375_v24  ;;  %v408_v55 = vrot.slane %v388_v37, %v375_v24  ;;  %v925_v57 = vrot.slane %v448_v40, %v447_v26 }
  0x1d   : > { %v542_v44 = vrot.slane %v523_v28, %v315_v22  ;;  %v546_v45 = vrot.slane %v523_v28, %v319_v23  ;;  %v550_v46 = vrot.slane %v524_v29, %v315_v22  ;;  %v554_v47 = vrot.slane %v524_v29, %v319_v23 }
  0x1e   : > { %v927_v58 = vrot.slane %v452_v41, %v447_v26  ;;  %v929_v59 = vrot.slane %v456_v42, %v447_v26  ;;  %v931_v60 = vrot.slane %v460_v43, %v447_v26 }
  0x1f   : > { %v933_v62 = vrot.slane %v542_v44, %v315_v22  ;;  %v935_v63 = vrot.slane %v546_v45, %v315_v22 }
  0x20   : > { %834 = vset.pattern.permute.xlu1 %v864_v5  ;;  %835 = vset.pattern.permute.xlu0 %v864_v5 }
  0x21   : > { %434 = vperm.xlu1 %834, %v293_v2   ;;  %438 = vperm.xlu0 %835, %v294_v3  }
  0x25   : > { %442 = vperm.xlu1 %834, %v295_v1   ;;  %837 = vset.pattern.permute.xlu0 %v862_v0  ;;  %v939_v1 = vrot.slane %v554_v47, %v315_v22 }
  0x26   : > { %597 = vperm.xlu0 %837, %v588_v6  }
  0x29   : > { %836 = vset.pattern.permute.xlu1 %v862_v0  ;;  %v937_v0 = vrot.slane %v550_v46, %v315_v22 }
  0x2a   : > { %592 = vperm.xlu1 %836, %v587_v7  }
  0x2e   : > { %602 = vperm.xlu1 %836, %v589_v8  }
  0x32   : > { %636 = vperm.xlu1 %836, %v797_v9  }
  0x92   : > { %v309_v38 = vpop.permute.xlu1 %308  ;;  %v299_v39 = vpop.permute.xlu0 %298 }
  0x93   : > { %v357_v2 = vmul.f32 %v336_v48, %v309_v38  ;;  %v358_v3 = vmul.f32 %v340_v49, %v309_v38  ;;  %v359_v4 = vmul.f32 %v344_v50, %v309_v38  ;;  %v360_v5 = vmul.f32 %v348_v51, %v309_v38 }
  0x94   : > { %v349_v6 = vmul.f32 %v336_v48, %v299_v39  ;;  %v350_v7 = vmul.f32 %v340_v49, %v299_v39  ;;  %v351_v8 = vmul.f32 %v344_v50, %v299_v39  ;;  %v352_v9 = vmul.f32 %v348_v51, %v299_v39 }
  0x96   : > { %v304_v56 = vpop.permute.xlu0 %303 }
  0x97   : > { %v363_v61 = vpop.permute.xlu1 %362  ;;  %v353_v14 = vmul.f32 %v336_v48, %v304_v56  ;;  %v354_v15 = vmul.f32 %v340_v49, %v304_v56  ;;  %v355_v16 = vmul.f32 %v344_v50, %v304_v56  ;;  %v356_v17 = vmul.f32 %v348_v51, %v304_v56 }
  0x98   : > { %v409_v10 = vmul.f32 %v396_v52, %v363_v61  ;;  %v410_v11 = vmul.f32 %v400_v53, %v363_v61  ;;  %v411_v12 = vmul.f32 %v404_v54, %v363_v61  ;;  %v412_v13 = vmul.f32 %v408_v55, %v363_v61 }
  0x9a   : > { %v421_v28 = vadd.f32 %v409_v10, %v349_v6  ;;  %v422_v29 = vadd.f32 %v410_v11, %v350_v7  ;;  %v423_v30 = vadd.f32 %v411_v12, %v351_v8  ;;  %v424_v31 = vadd.f32 %v412_v13, %v352_v9 }
  0x9b   : > { %v371_v18 = vpop.permute.xlu1 %370  ;;  %v367_v19 = vpop.permute.xlu0 %366 }
  0x9c   : > { %v417_v20 = vmul.f32 %v396_v52, %v371_v18  ;;  %v418_v21 = vmul.f32 %v400_v53, %v371_v18  ;;  %v419_v22 = vmul.f32 %v404_v54, %v371_v18  ;;  %v420_v23 = vmul.f32 %v408_v55, %v371_v18 }
  0x9d   : > { %v413_v24 = vmul.f32 %v396_v52, %v367_v19  ;;  %v414_v25 = vmul.f32 %v400_v53, %v367_v19  ;;  %v415_v26 = vmul.f32 %v404_v54, %v367_v19  ;;  %v416_v27 = vmul.f32 %v408_v55, %v367_v19 }
  0x9e   : > { %v429_v32 = vadd.f32 %v417_v20, %v357_v2  ;;  %v430_v33 = vadd.f32 %v418_v21, %v358_v3  ;;  %v431_v34 = vadd.f32 %v419_v22, %v359_v4  ;;  %v432_v35 = vadd.f32 %v420_v23, %v360_v5 }
  0x9f   : > { %v425_v36 = vadd.f32 %v413_v24, %v353_v14  ;;  %v426_v37 = vadd.f32 %v414_v25, %v354_v15  ;;  %v427_v38 = vadd.f32 %v415_v26, %v355_v16  ;;  %v428_v39 = vadd.f32 %v416_v27, %v356_v17 }
  0xa0   : > { %v435_v40 = vpop.permute.xlu1 %434  ;;  %v439_v41 = vpop.permute.xlu0 %438 }
  0xa1   : > { %v481_v42 = vmul.f32 %v925_v57, %v435_v40  ;;  %v482_v43 = vmul.f32 %v927_v58, %v435_v40  ;;  %v483_v44 = vmul.f32 %v929_v59, %v435_v40  ;;  %v484_v45 = vmul.f32 %v931_v60, %v435_v40 }
  0xa2   : > { %v485_v46 = vmul.f32 %v925_v57, %v439_v41  ;;  %v486_v47 = vmul.f32 %v927_v58, %v439_v41  ;;  %v487_v48 = vmul.f32 %v929_v59, %v439_v41  ;;  %v488_v49 = vmul.f32 %v931_v60, %v439_v41 }
  0xa3   : > { %v493_v50 = vadd.f32 %v481_v42, %v421_v28  ;;  %v494_v51 = vadd.f32 %v482_v43, %v422_v29  ;;  %v495_v52 = vadd.f32 %v483_v44, %v423_v30  ;;  %v496_v53 = vadd.f32 %v484_v45, %v424_v31 }
  0xa4   : > { %v497_v54 = vadd.f32 %v485_v46, %v425_v36  ;;  %v498_v55 = vadd.f32 %v486_v47, %v426_v37  ;;  %v499_v56 = vadd.f32 %v487_v48, %v427_v38  ;;  %v500_v61 = vadd.f32 %v488_v49, %v428_v39  ;;  %v443_v2 = vpop.permute.xlu1 %442 }
  0xa5   : > { %v525_v3 = vmul.f32 2.0, %v493_v50  ;;  %v526_v4 = vmul.f32 2.0, %v494_v51  ;;  %v527_v5 = vmul.f32 2.0, %v495_v52  ;;  %v528_v6 = vmul.f32 2.0, %v496_v53  ;;  %v598_v19 = vpop.permute.xlu0 %597 }
  0xa6   : > { %v489_v7 = vmul.f32 %v925_v57, %v443_v2  ;;  %v490_v8 = vmul.f32 %v927_v58, %v443_v2  ;;  %v491_v9 = vmul.f32 %v929_v59, %v443_v2  ;;  %v492_v10 = vmul.f32 %v931_v60, %v443_v2 }
  0xa7   : > { %v529_v11 = vmul.f32 2.0, %v497_v54  ;;  %v530_v12 = vmul.f32 2.0, %v498_v55  ;;  %v531_v13 = vmul.f32 2.0, %v499_v56  ;;  %v532_v14 = vmul.f32 2.0, %v500_v61 }
  0xa8   : > { %v501_v15 = vadd.f32 %v489_v7, %v429_v32  ;;  %v502_v16 = vadd.f32 %v490_v8, %v430_v33  ;;  %v503_v17 = vadd.f32 %v491_v9, %v431_v34  ;;  %v504_v18 = vadd.f32 %v492_v10, %v432_v35 }
  0xa9   : > { %v579_v20 = vsub.f32 %v933_v62, %v529_v11  ;;  %v580_v21 = vsub.f32 %v935_v63, %v530_v12  ;;  %v581_v57 = vsub.f32 %v937_v0, %v531_v13  ;;  %v582_v58 = vsub.f32 %v939_v1, %v532_v14  ;;  %v593_v59 = vpop.permute.xlu1 %592 }
  0xaa   : > { %v533_v60 = vmul.f32 2.0, %v501_v15  ;;  %v534_v22 = vmul.f32 2.0, %v502_v16  ;;  %v535_v23 = vmul.f32 2.0, %v503_v17  ;;  %v536_v24 = vmul.f32 2.0, %v504_v18 }
  0xab   : > { %v609_v25 = vadd.f32 %v598_v19, %v579_v20  ;;  %v610_v26 = vadd.f32 %v598_v19, %v580_v21  ;;  %v611_v27 = vadd.f32 %v598_v19, %v581_v57  ;;  %v612_v28 = vadd.f32 %v598_v19, %v582_v58 }
  0xac   : > { %v575_v29 = vsub.f32 %v933_v62, %v525_v3  ;;  %v576_v30 = vsub.f32 %v935_v63, %v526_v4  ;;  %v577_v31 = vsub.f32 %v937_v0, %v527_v5  ;;  %v578_v32 = vsub.f32 %v939_v1, %v528_v6 }
  0xad   : > { %v621_v33 = vmax.f32 %v609_v25, 0.0  ;;  %v622_v34 = vmax.f32 %v610_v26, 0.0  ;;  %v623_v35 = vmax.f32 %v611_v27, 0.0  ;;  %v624_v36 = vmax.f32 %v612_v28, 0.0  ;;  %v603_v37 = vpop.permute.xlu1 %602 }
  0xae   : > { %v605_v38 = vadd.f32 %v593_v59, %v575_v29  ;;  %v606_v39 = vadd.f32 %v593_v59, %v576_v30  ;;  %v607_v40 = vadd.f32 %v593_v59, %v577_v31  ;;  %v608_v41 = vadd.f32 %v593_v59, %v578_v32 }
  0xaf   : > { %v583_v42 = vsub.f32 %v933_v62, %v533_v60  ;;  %v584_v43 = vsub.f32 %v935_v63, %v534_v22  ;;  %v585_v44 = vsub.f32 %v937_v0, %v535_v23  ;;  %v586_v45 = vsub.f32 %v939_v1, %v536_v24 }
  0xb0   : > { %v617_v46 = vmax.f32 %v605_v38, 0.0  ;;  %v618_v47 = vmax.f32 %v606_v39, 0.0  ;;  %v619_v48 = vmax.f32 %v607_v40, 0.0  ;;  %v620_v49 = vmax.f32 %v608_v41, 0.0 }
  0xb1   : > { %v613_v50 = vadd.f32 %v603_v37, %v583_v42  ;;  %v614_v51 = vadd.f32 %v603_v37, %v584_v43  ;;  %v615_v52 = vadd.f32 %v603_v37, %v585_v44  ;;  %v616_v62 = vadd.f32 %v603_v37, %v586_v45  ;;  %v637_v63 = vpop.permute.xlu1 %636 }
  0xb2   : > { %v639_v0 = vmul.f32 %v637_v63, %v617_v46  ;;  %v640_v1 = vmul.f32 %v637_v63, %v618_v47  ;;  %v641_v53 = vmul.f32 %v637_v63, %v619_v48  ;;  %v642_v54 = vmul.f32 %v637_v63, %v620_v49 }
  0xb3   : > { %v625_v55 = vmax.f32 %v613_v50, 0.0  ;;  %v626_v56 = vmax.f32 %v614_v51, 0.0  ;;  %v627_v61 = vmax.f32 %v615_v52, 0.0  ;;  %v628_v2 = vmax.f32 %v616_v62, 0.0 }
  0xb4   : > { %v643_v3 = vmul.f32 %v637_v63, %v621_v33  ;;  %v644_v4 = vmul.f32 %v637_v63, %v622_v34  ;;  %v645_v5 = vmul.f32 %v637_v63, %v623_v35  ;;  %v646_v6 = vmul.f32 %v637_v63, %v624_v36  ;;  %651 = vst [vmem:[%s969_s10] sm:$0xff] %v639_v0 }
  0xb5   : > { %652 = vst [vmem:[%s969_s10 + $0x8] sm:$0xff] %v640_v1  ;;  %653 = vst [vmem:[%s969_s10 + $0x10] sm:$0xff] %v641_v53  ;;  %v647_v7 = vmul.f32 %v637_v63, %v625_v55  ;;  %v648_v8 = vmul.f32 %v637_v63, %v626_v56  ;;  %v649_v9 = vmul.f32 %v637_v63, %v627_v61 }
  0xb6   : > { %654 = vst [vmem:[%s969_s10 + $0x18] sm:$0xff] %v642_v54  ;;  %v650_v10 = vmul.f32 %v637_v63, %v628_v2  ;;  %655 = vst [vmem:[%s969_s10 + $0x20] sm:$0xff] %v643_v3 }
  0xb7   : > { %656 = vst [vmem:[%s969_s10 + $0x28] sm:$0xff] %v644_v4  ;;  %657 = vst [vmem:[%s969_s10 + $0x30] sm:$0xff] %v645_v5 }
  0xb8   : > { %658 = vst [vmem:[%s969_s10 + $0x38] sm:$0xff] %v646_v6  ;;  %659 = vst [vmem:[%s969_s10 + $0x40] sm:$0x1f] %v647_v7 }
  0xb9   : > { %660 = vst [vmem:[%s969_s10 + $0x48] sm:$0x1f] %v648_v8  ;;  %661 = vst [vmem:[%s969_s10 + $0x50] sm:$0x1f] %v649_v9 }
  0xba   : > { %662 = vst [vmem:[%s969_s10 + $0x58] sm:$0x1f] %v650_v10 }
  0xbb PF: > { %s14_s17 = sadd.s32 1, %s860_s17   ;;  %s997_s15 = smov %s856_s16 }
  0xbc   : > { %p11_p5 = scmp.ge.s32.totalorder %s14_s17, 4   ;;  %s998_s16 = smov %s1000_s18 }
  0xbe   :  { %13 = sbr.rel (!%p11_p5) target bundleno = 2 (0x2), region = 75 }

</bundles_post_ra>
